<compile_context>
chip_gen: v7x
topology: tpu7x:2x2x1
jax: 0.10.0
libtpu: 0.0.40
codegen_flags: <defaults>
</compile_context>

<pallas_src>
import jax
import jax.numpy as jnp
from jax.experimental import pallas as pl
from jax.experimental.pallas import tpu as pltpu

_LANES = 128
_MAX_BLOCK_ROWS = 1024   # 1024 * 128 * 4 B = 512 KiB per input block
_EPS = 1e-8


def _balanced_bce_partials_kernel(x_ref, t_ref, part_ref):
    """Per-block partial sums for balanced BCE.

    Writes a (1, 4, 128) block of lane-wise partials:
      row 0: count of targets == 1
      row 1: count of targets == 0
      row 2: sum of BCE over targets == 1
      row 3: sum of BCE over all elements in the block
    """
    x = x_ref[...].astype(jnp.float32)
    t = t_ref[...].astype(jnp.float32)

    is_pos = t == 1.0
    is_neg = t == 0.0

    # Single-log BCE with PyTorch's -100 log clamp (binary targets).
    p_true = jnp.where(is_pos, x, 1.0 - x)
    bce = -jnp.maximum(jnp.log(p_true), -100.0)

    pos_f = is_pos.astype(jnp.float32)
    neg_f = is_neg.astype(jnp.float32)
    bce_pos = jnp.where(is_pos, bce, 0.0)

    part = jnp.concatenate(
        [
            jnp.sum(pos_f, axis=0, keepdims=True),
            jnp.sum(neg_f, axis=0, keepdims=True),
            jnp.sum(bce_pos, axis=0, keepdims=True),
            jnp.sum(bce, axis=0, keepdims=True),
        ],
        axis=0,
    )                                    # (4, 128)
    part_ref[...] = part[None, :, :]     # (1, 4, 128)


def balanced_bce_loss(inputs, targets, eps=_EPS):
    n = inputs.size
    x = inputs.reshape(-1)
    t = targets.reshape(-1)

    rows_needed = -(-n // _LANES)                          # ceil(n / 128)
    block_rows = min(_MAX_BLOCK_ROWS, ((rows_needed + 7) // 8) * 8)
    block_elems = block_rows * _LANES
    grid = -(-n // block_elems)
    n_pad = grid * block_elems
    pad = n_pad - n

    # Padded tail: x=0, t=0 contributes 0 to every BCE sum and exactly `pad`
    # to the negative count (subtracted below), so no in-kernel mask is needed.
    # TODO(synk): a masked final block would avoid the jnp.pad copy for sizes
    # that are not a multiple of the block.
    if pad:
        x = jnp.pad(x, (0, pad))
        t = jnp.pad(t, (0, pad))
    x2 = x.reshape(n_pad // _LANES, _LANES)
    t2 = t.reshape(n_pad // _LANES, _LANES)

    parts = pl.pallas_call(
        _balanced_bce_partials_kernel,
        out_shape=jax.ShapeDtypeStruct((grid, 4, _LANES), jnp.float32),
        grid=(grid,),
        in_specs=[
            pl.BlockSpec((block_rows, _LANES), lambda i: (i, 0)),
            pl.BlockSpec((block_rows, _LANES), lambda i: (i, 0)),
        ],
        out_specs=pl.BlockSpec((1, 4, _LANES), lambda i: (i, 0, 0)),
        compiler_params=pltpu.CompilerParams(
            dimension_semantics=("parallel",),
        ),
    )(x2, t2)

    sums = jnp.sum(parts, axis=(0, 2))        # (4,)
    pos = sums[0]
    neg = sums[1] - jnp.float32(pad)
    s_pos = sums[2]
    s_tot = sums[3]

    pos_weight = neg / (pos + jnp.float32(eps))
    loss = (pos_weight * s_pos + (s_tot - s_pos)) / jnp.float32(n)
    return loss


def _reference_loss(inputs, targets, eps=_EPS):
    x = inputs.astype(jnp.float32)
    t = targets.astype(jnp.float32)
    pos = jnp.sum(t == 1.0).astype(jnp.float32)
    neg = jnp.sum(t == 0.0).astype(jnp.float32)
    pos_weight = neg / (pos + eps)
    w = jnp.where(t == 1.0, pos_weight, 1.0)
    bce = -(t * jnp.maximum(jnp.log(x), -100.0)
            + (1.0 - t) * jnp.maximum(jnp.log(1.0 - x), -100.0))
    return jnp.mean(w * bce)


if __name__ == "__main__":
    key = jax.random.PRNGKey(0)
    k1, k2 = jax.random.split(key)

    # NCHW probabilities and binary targets, small shapes.
    shape = (2, 4, 16, 16)
    inputs = jax.nn.sigmoid(jax.random.normal(k1, shape, dtype=jnp.float32))
    targets = jax.random.bernoulli(k2, p=0.25, shape=shape).astype(jnp.float32)

    loss = jax.block_until_ready(balanced_bce_loss(inputs, targets))
    ref = jax.block_until_ready(_reference_loss(inputs, targets))
    assert jnp.allclose(loss, ref, rtol=1e-5, atol=1e-5), (loss, ref)

    print("KERNEL_OK")
</pallas_src>

<mosaic_0001>
module attributes {stable_mosaic.version = 11 : i64} {
  func.func @_balanced_bce_partials_kernel(%arg0: i32, %arg1: memref<16x128xf32, #tpu.memory_space<vmem>>, %arg2: memref<16x128xf32, #tpu.memory_space<vmem>>, %arg3: memref<1x4x128xf32, #tpu.memory_space<vmem>>) attributes {dimension_semantics = [#tpu.dimension_semantics<parallel>], iteration_bounds = array<i64: 1>, scalar_prefetch = 0 : i64, scratch_operands = 0 : i64, tpu.core_type = #tpu.core_type<tc>, window_params = [{transform_indices = @transform_0, window_bounds = array<i64: 16, 128>}, {transform_indices = @transform_1, window_bounds = array<i64: 16, 128>}, {transform_indices = @transform_2, window_bounds = array<i64: 1, 4, 128>}]} {
    %c0 = arith.constant 0 : index
    %c0_0 = arith.constant 0 : index
    %0 = vector.load %arg1[%c0, %c0_0] : memref<16x128xf32, #tpu.memory_space<vmem>>, vector<16x128xf32>
    %c0_1 = arith.constant 0 : index
    %c0_2 = arith.constant 0 : index
    %1 = vector.load %arg2[%c0_1, %c0_2] : memref<16x128xf32, #tpu.memory_space<vmem>>, vector<16x128xf32>
    %cst = arith.constant 1.000000e+00 : f32
    %2 = vector.broadcast %cst : f32 to vector<16x128xf32>
    %3 = arith.cmpf oeq, %1, %2 : vector<16x128xf32>
    %cst_3 = arith.constant 0.000000e+00 : f32
    %4 = vector.broadcast %cst_3 : f32 to vector<16x128xf32>
    %5 = arith.cmpf oeq, %1, %4 : vector<16x128xf32>
    %cst_4 = arith.constant 1.000000e+00 : f32
    %6 = vector.broadcast %cst_4 : f32 to vector<16x128xf32>
    %7 = arith.subf %6, %0 : vector<16x128xf32>
    %8 = arith.select %3, %0, %7 : vector<16x128xi1>, vector<16x128xf32>
    %9 = math.log %8 : vector<16x128xf32>
    %cst_5 = arith.constant -1.000000e+02 : f32
    %10 = vector.broadcast %cst_5 : f32 to vector<16x128xf32>
    %11 = arith.maximumf %9, %10 : vector<16x128xf32>
    %cst_6 = arith.constant 0.000000e+00 : f32
    %12 = vector.broadcast %cst_6 : f32 to vector<16x128xf32>
    %13 = arith.subf %12, %11 : vector<16x128xf32>
    %14 = arith.extui %3 : vector<16x128xi1> to vector<16x128xi32>
    %15 = arith.sitofp %14 : vector<16x128xi32> to vector<16x128xf32>
    %16 = arith.extui %5 : vector<16x128xi1> to vector<16x128xi32>
    %17 = arith.sitofp %16 : vector<16x128xi32> to vector<16x128xf32>
    %cst_7 = arith.constant 0.000000e+00 : f32
    %18 = vector.broadcast %cst_7 : f32 to vector<16x128xf32>
    %19 = arith.select %3, %13, %18 : vector<16x128xi1>, vector<16x128xf32>
    %cst_8 = arith.constant dense<0.000000e+00> : vector<128xf32>
    %20 = vector.multi_reduction <add>, %15, %cst_8 [0] : vector<16x128xf32> to vector<128xf32>
    %21 = vector.shape_cast %20 : vector<128xf32> to vector<1x128xf32>
    %cst_9 = arith.constant dense<0.000000e+00> : vector<128xf32>
    %22 = vector.multi_reduction <add>, %17, %cst_9 [0] : vector<16x128xf32> to vector<128xf32>
    %23 = vector.shape_cast %22 : vector<128xf32> to vector<1x128xf32>
    %cst_10 = arith.constant dense<0.000000e+00> : vector<128xf32>
    %24 = vector.multi_reduction <add>, %19, %cst_10 [0] : vector<16x128xf32> to vector<128xf32>
    %25 = vector.shape_cast %24 : vector<128xf32> to vector<1x128xf32>
    %cst_11 = arith.constant dense<0.000000e+00> : vector<128xf32>
    %26 = vector.multi_reduction <add>, %13, %cst_11 [0] : vector<16x128xf32> to vector<128xf32>
    %27 = vector.shape_cast %26 : vector<128xf32> to vector<1x128xf32>
    %28 = tpu.concatenate %21, %23, %25, %27 in 0 : vector<1x128xf32>, vector<1x128xf32>, vector<1x128xf32>, vector<1x128xf32> -> vector<4x128xf32>
    %29 = vector.shape_cast %28 : vector<4x128xf32> to vector<1x4x128xf32>
    %c0_12 = arith.constant 0 : index
    %c0_13 = arith.constant 0 : index
    %c0_14 = arith.constant 0 : index
    %30 = vector.load %arg3[%c0_12, %c0_13, %c0_14] : memref<1x4x128xf32, #tpu.memory_space<vmem>>, vector<1x4x128xf32>
    tpu.vector_store %arg3[%c0_12, %c0_13, %c0_14], %29 {strides = array<i32>} : memref<1x4x128xf32, #tpu.memory_space<vmem>>, vector<1x4x128xf32>,
    return
  }
  func.func @transform_0(%arg0: i32) -> (i32, i32) {
    %c0_i32 = arith.constant 0 : i32
    %c0_i32_0 = arith.constant 0 : i32
    return %arg0, %c0_i32 : i32, i32
  }
  func.func @transform_1(%arg0: i32) -> (i32, i32) {
    %c0_i32 = arith.constant 0 : i32
    %c0_i32_0 = arith.constant 0 : i32
    return %arg0, %c0_i32 : i32, i32
  }
  func.func @transform_2(%arg0: i32) -> (i32, i32, i32) {
    %c0_i32 = arith.constant 0 : i32
    %c0_i32_0 = arith.constant 0 : i32
    %c0_i32_1 = arith.constant 0 : i32
    return %arg0, %c0_i32, %c0_i32_0 : i32, i32, i32
  }
}

</mosaic_0001>

<bundles_post_ra>
// kernel: tpu_custom_call.1
= control target key start
LH: loop header
LB: loop body
LE: loop exit
PB: predicated region body
PF: predicated region fallthrough
CT: control target
= control target key end

     0   :  { %7 = vsyncpa [#allocation3], 0  ;;  %s270_s0 = inlined_call_operand.hbm [shape: f32[16,128], index: 0, kind: input, shape index: {}]   ;;  %s271_s1 = inlined_call_operand.hbm [shape: f32[16,128], index: 1, kind: input, shape index: {}]   ;;  %s272_s2 = inlined_call_operand.hbm [shape: f32[1,4,128], index: 2, kind: output, shape index: {}]  }
   0x1   :  { %8 = vsyncpa [#allocation6], 0 }
   0x2   :  { %9 = vsyncpa [#allocation4], 0  ;;  %s207_s9 = smov [#allocation2]   ;;  %s135_s13 = scalar_lea.hbm %s270_s0, 256 }
   0x3   :  { %s15_s10 = sshll.u32 %s207_s9, 4  ;;  %p136_p0 = scmp.ne.s32.totalorder %s270_s0, %s135_s13  ;;  %s16_s10 = int_to_ptr.vmem [resolvable:$true] %s15_s10 }
   0x4   :  { %p139_p1 = scmp.lt.u32.totalorder %s135_s13, %s270_s0 }
   0x6   :  { %p141_p2 = pnand %p139_p1, %p136_p0 }
   0x8   :  { %144 = shalt.err (!%p141_p2)
}
   0x9   :  { %s145_s18 = scalar_lea.vmem %s16_s10, 256  ;;  %p150_p4 = scmp.lt.s32.totalorder %s16_s10, %s16_s10 }
   0xa   :  { %p146_p3 = scmp.ne.s32.totalorder %s16_s10, %s145_s18  ;;  %p151_p5 = scmp.lt.s32.totalorder %s145_s18, %s145_s18 }
   0xc   :  { %p152_p6 = por %p151_p5, %p150_p4 }
   0xe   :  { %p153_p7 = pnand %p152_p6, %p146_p3 }
  0x10   :  { %156 = shalt.err (!%p153_p7)
}
  0x11   :  { %s208_s19 = smov 128   ;;  %s209_s20 = smov 8  }
  0x12   :  { %21 = dma.hbm_to_vmem [thread:$0]  %s270_s0, 256, %s16_s10, [#allocation3], %s208_s19, %s208_s19, %s209_s20  }
  0x13   :  { %s210_s23 = smov [#allocation5]   ;;  %s157_s27 = scalar_lea.hbm %s271_s1, 256 }
  0x14   :  { %s27_s24 = sshll.u32 %s210_s23, 4  ;;  %p158_p8 = scmp.ne.s32.totalorder %s271_s1, %s157_s27  ;;  %s28_s24 = int_to_ptr.vmem [resolvable:$true] %s27_s24 }
  0x15   :  { %p161_p9 = scmp.lt.u32.totalorder %s157_s27, %s271_s1 }
  0x17   :  { %p163_p10 = pnand %p161_p9, %p158_p8 }
  0x19   :  { %166 = shalt.err (!%p163_p10)
}
  0x1a   :  { %s167_s4 = scalar_lea.vmem %s28_s24, 256  ;;  %p172_p12 = scmp.lt.s32.totalorder %s28_s24, %s28_s24 }
  0x1b   :  { %p168_p11 = scmp.ne.s32.totalorder %s28_s24, %s167_s4  ;;  %p173_p13 = scmp.lt.s32.totalorder %s167_s4, %s167_s4 }
  0x1d   :  { %p174_p0 = por %p173_p13, %p172_p12 }
  0x1f   :  { %p175_p1 = pnand %p174_p0, %p168_p11 }
  0x21   :  { %178 = shalt.err (!%p175_p1)
}
  0x22   :  { %33 = dma.hbm_to_vmem [thread:$0]  %s271_s1, 256, %s28_s24, [#allocation6], %s208_s19, %s208_s19, %s209_s20  }
  0x23   :  { %201 = dma.done.wait [#allocation3], 256  }
  0x24   :  { %202 = vsyncadd [#allocation3], 4294967040 }
  0x25   :  { %203 = dma.done.wait [#allocation6], 256  }
  0x26   :  { %204 = vsyncadd [#allocation6], 4294967040  ;;  %v40_v0 = vld [vmem:[#allocation2] sm:$0xff]  ;;  %v41_v1 = vld [vmem:[#allocation2 + $0x8] sm:$0xff]  ;;  %v211_v6 = vmov 0.0   ;;  %vm98_vm4 = vcmask 1040384  }
  0x27   :  { %v42_v2 = vld [vmem:[#allocation5] sm:$0xff]  ;;  %v43_v3 = vld [vmem:[#allocation5 + $0x8] sm:$0xff]  ;;  %v48_v4 = vsub.f32 1.0, %v40_v0  ;;  %v49_v5 = vsub.f32 1.0, %v41_v1  ;;  %vm100_vm5 = vcmask 1041408   ;;  %s212_s1 = smov [#allocation7]  }
  0x28   :  { %vm44_vm0 = vcmp.eq.f32.partialorder %v42_v2, 1.0  ;;  %vm46_vm1 = vcmp.eq.f32.partialorder %v42_v2, 0.0  ;;  %vm45_vm2 = vcmp.eq.f32.partialorder %v43_v3, 1.0  ;;  %vm47_vm3 = vcmp.eq.f32.partialorder %v43_v3, 0.0  ;;  %s111_s6 = sshll.u32 %s212_s1, 4  ;;  %s112_s6 = int_to_ptr.vmem [resolvable:$true] %s111_s6 }
  0x29   :  { %v121_v7 = vsel %vm44_vm0, 1.0, %v211_v6  ;;  %v123_v8 = vsel %vm46_vm1, 1.0, %v211_v6  ;;  %v50_v9 = vsel %vm44_vm0, %v40_v0, %v48_v4  ;;  %v51_v10 = vsel %vm45_vm2, %v41_v1, %v49_v5  ;;  %s179_s7 = scalar_lea.vmem %s112_s6, 64  ;;  %p184_p3 = scmp.lt.s32.totalorder %s112_s6, %s112_s6 }
  0x2a   :  { %v122_v11 = vsel %vm45_vm2, 1.0, %v211_v6  ;;  %v124_v12 = vsel %vm47_vm3, 1.0, %v211_v6  ;;  %131 = vlog2.f32 %v50_v9  ;;  %vm102_vm6 = vcmask 1042432   ;;  %p180_p2 = scmp.ne.s32.totalorder %s112_s6, %s179_s7  ;;  %p185_p4 = scmp.lt.s32.totalorder %s179_s7, %s179_s7 }
  0x2b   :  { %133 = vlog2.f32 %v51_v10  ;;  %v70_v13 = vadd.f32 %v122_v11, %v121_v7  ;;  %v77_v14 = vadd.f32 %v124_v12, %v123_v8 }
  0x2c   :  { %p186_p5 = por %p185_p4, %p184_p3 }
  0x2d   :  { %v71_v15 = vrot.slane %v70_v13, 4  ;;  %v78_v16 = vrot.slane %v77_v14, 4 }
  0x2e   :  { %p187_p6 = pnand %p186_p5, %p180_p2 }
  0x2f   :  { %v72_v18 = vadd.f32 %v71_v15, %v70_v13  ;;  %v79_v19 = vadd.f32 %v78_v16, %v77_v14 }
  0x31   :  { %v73_v25 = vrot.slane %v72_v18, 2  ;;  %v80_v26 = vrot.slane %v79_v19, 2 }
  0x33   :  { %v74_v31 = vadd.f32 %v73_v25, %v72_v18  ;;  %v81_v32 = vadd.f32 %v80_v26, %v79_v19 }
  0x34   :  { %v132_v17 = vpop.eup %131 }
  0x35   :  { %v134_v20 = vpop.eup %133  ;;  %v53_v21 = vmul.f32 0.6931472, %v132_v17  ;;  %v75_v37 = vrot.slane %v74_v31, 1  ;;  %v82_v38 = vrot.slane %v81_v32, 1 }
  0x36   :  { %v55_v22 = vmul.f32 0.6931472, %v134_v20 }
  0x37   :  { %v56_v23 = vmax.f32 %v53_v21, -100.0  ;;  %v76_v43 = vadd.f32 %v75_v37, %v74_v31  ;;  %v83_v44 = vadd.f32 %v82_v38, %v81_v32 }
  0x38   :  { %v57_v24 = vmax.f32 %v55_v22, -100.0 }
  0x39   :  { %v58_v27 = vsub.f32 0.0, %v56_v23  ;;  %v99_v50 = vsel %vm98_vm4, %v76_v43, %v83_v44 }
  0x3a   :  { %v59_v28 = vsub.f32 0.0, %v57_v24 }
  0x3b   :  { %v68_v29 = vsel %vm44_vm0, %v58_v27, 0.0 }
  0x3c   :  { %v69_v30 = vsel %vm45_vm2, %v59_v28, 0.0  ;;  %v91_v33 = vadd.f32 %v59_v28, %v58_v27 }
  0x3d   :  { %v84_v34 = vadd.f32 %v69_v30, %v68_v29 }
  0x3e   :  { %v92_v35 = vrot.slane %v91_v33, 4 }
  0x3f   :  { %v85_v36 = vrot.slane %v84_v34, 4 }
  0x40   :  { %v93_v39 = vadd.f32 %v92_v35, %v91_v33 }
  0x41   :  { %v86_v40 = vadd.f32 %v85_v36, %v84_v34 }
  0x42   :  { %v94_v41 = vrot.slane %v93_v39, 2 }
  0x43   :  { %v87_v42 = vrot.slane %v86_v40, 2 }
  0x44   :  { %v95_v45 = vadd.f32 %v94_v41, %v93_v39 }
  0x45   :  { %v88_v46 = vadd.f32 %v87_v42, %v86_v40 }
  0x46   :  { %v96_v47 = vrot.slane %v95_v45, 1 }
  0x47   :  { %v89_v48 = vrot.slane %v88_v46, 1 }
  0x48   :  { %v97_v49 = vadd.f32 %v96_v47, %v95_v45 }
  0x49   :  { %v90_v51 = vadd.f32 %v89_v48, %v88_v46 }
  0x4b   :  { %v101_v52 = vsel %vm100_vm5, %v99_v50, %v90_v51 }
  0x4c   :  { %v103_v53 = vsel %vm102_vm6, %v101_v52, %v97_v49 }
  0x4d   :  { %104 = vst [vmem:[#allocation7] sm:$0xf] %v103_v53 }
  0x4e   :  { %190 = shalt.err (!%p187_p6)
}
  0x4f   :  { %s191_s10 = scalar_lea.hbm %s272_s2, 64 }
  0x50   :  { %p192_p7 = scmp.ne.s32.totalorder %s272_s2, %s191_s10  ;;  %p195_p8 = scmp.lt.u32.totalorder %s191_s10, %s272_s2 }
  0x52   :  { %p197_p9 = pnand %p195_p8, %p192_p7 }
  0x54   :  { %200 = shalt.err (!%p197_p9)
}
  0x55   :  { %114 = dma.vmem_to_hbm [thread:$0]  %s112_s6, 64, %s272_s2, [#allocation4]  }
  0x56   :  { %205 = dma.done.wait [#allocation4], 64  }
  0x57   :  { %206 = vsyncadd [#allocation4], 4294967232 }
  0x58   :  { %118 = vsyncpa [#allocation3], 1 }
  0x59   :  { %119 = vsyncpa [#allocation6], 1 }
  0x5a   :  { %120 = vsyncpa [#allocation4], 1 }

</bundles_post_ra>
